<compile_context>
chip_gen: v5e
topology: v5e:2x2
jax: 0.10.0
libtpu: 0.0.40
codegen_flags: <defaults>
</compile_context>

<pallas_src>
import jax
import jax.numpy as jnp
from jax.experimental import pallas as pl
from jax.experimental.pallas import tpu as pltpu

LANE = 128
SUBLANE = 8


def _round_up(x, m):
    return -(-x // m) * m


def _make_linear_kernel(group_pad, n_groups):
    def kernel(x_ref, w_ref, b_ref, *o_refs):
        # x_ref: (B_pad, in_c) bf16, w_ref: (in_c, n_groups*group_pad) bf16,
        # b_ref: (1, n_groups*group_pad) f32,
        # o_refs: n_groups refs of (B_pad, group_pad) f32 (lane-dense).
        acc = jnp.dot(x_ref[...], w_ref[...], preferred_element_type=jnp.float32)
        acc = acc + b_ref[...]  # f32 epilogue
        for g, o_ref in enumerate(o_refs):
            # group_pad is a multiple of 128 and B_pad a multiple of 8, so this
            # slice is (8,128)-tile aligned: free, lane-dense store per group.
            o_ref[...] = acc[:, g * group_pad:(g + 1) * group_pad].astype(o_ref.dtype)

    return kernel


def pallas_linear_grouped(x2d_pad, w_pad, b2d_pad, *, n_groups, group_pad):
    """x2d_pad: (B_pad, in_c) bf16, w_pad: (in_c, n_groups*group_pad) bf16,
    b2d_pad: (1, n_groups*group_pad) f32 -> tuple of n_groups (B_pad, group_pad) f32."""
    B_pad, in_c = x2d_pad.shape
    out_pad = w_pad.shape[1]
    assert out_pad == n_groups * group_pad

    out_shape = tuple(
        jax.ShapeDtypeStruct((B_pad, group_pad), jnp.float32) for _ in range(n_groups)
    )
    vmem = pl.BlockSpec(memory_space=pltpu.MemorySpace.VMEM)
    cost = pl.CostEstimate(
        flops=2 * B_pad * in_c * out_pad,
        transcendentals=0,
        bytes_accessed=(
            x2d_pad.size * 2            # bf16 activations
            + w_pad.size * 2            # bf16 weights (dominant HBM traffic)
            + b2d_pad.size * 4
            + n_groups * B_pad * group_pad * 4
        ),
    )
    # TODO(synk): for large in_c / B, add a K grid axis ('arbitrary') with an
    # f32 VMEM accumulator plus a 'parallel' batch axis (v7x: 2 TCs, 32 MiB
    # scoped VMEM -> halve the K tile and set vmem_limit_bytes explicitly).
    return pl.pallas_call(
        _make_linear_kernel(group_pad, n_groups),
        out_shape=out_shape,
        in_specs=[vmem, vmem, vmem],
        out_specs=tuple(vmem for _ in range(n_groups)),
        cost_estimate=cost,
    )(x2d_pad, w_pad, b2d_pad)


class FlattenPallas:
    """JAX/Pallas port of the PyTorch Flatten module."""

    def __init__(self, in_c, classes, wa, key):
        self.in_c = in_c
        self.classes = classes
        self.wa = wa
        self.n_groups = 2 if wa else 1
        self.group_pad = _round_up(classes, LANE)
        out_features = classes * self.n_groups
        out_pad = self.n_groups * self.group_pad

        k_w, k_b = jax.random.split(key)
        # Deterministic init mimicking nn.Linear's U(-1/sqrt(in_c), 1/sqrt(in_c)).
        bound = 1.0 / (in_c ** 0.5)
        # Logical (in_c, out_features) weight (transpose of torch's (out, in)).
        w_full = jax.random.uniform(
            k_w, (in_c, out_features), jnp.float32, -bound, bound
        )
        b_full = jax.random.uniform(
            k_b, (out_features,), jnp.float32, -bound, bound
        )

        # Lay out as lane-aligned 128-padded column groups: group g (mu/sigma)
        # occupies columns [g*group_pad, g*group_pad + classes); pad cols are 0.
        w_pad = jnp.zeros((in_c, out_pad), jnp.float32)
        b_pad = jnp.zeros((out_pad,), jnp.float32)
        for g in range(self.n_groups):
            w_pad = w_pad.at[:, g * self.group_pad: g * self.group_pad + classes].set(
                w_full[:, g * classes:(g + 1) * classes]
            )
            b_pad = b_pad.at[g * self.group_pad: g * self.group_pad + classes].set(
                b_full[g * classes:(g + 1) * classes]
            )
        # bf16 weights halve HBM->VMEM bytes; MXU feeds bf16 natively with f32 acc.
        self.weight = w_pad.astype(jnp.bfloat16)
        self.bias2d = b_pad.reshape(1, out_pad)  # bias stays f32

    def __call__(self, x):
        # x: (B, C, H, W) NCHW -> flatten to (B, in_c), row-major like torch .view
        B = x.shape[0]
        x2d = x.reshape(B, -1)
        assert x2d.shape[1] == self.in_c, (x2d.shape, self.in_c)

        # Pad batch to a full sublane tile so stores are sublane-dense.
        B_pad = _round_up(max(B, SUBLANE), SUBLANE)
        x2d_pad = (
            jnp.zeros((B_pad, self.in_c), jnp.bfloat16)
            .at[:B]
            .set(x2d.astype(jnp.bfloat16))
        )

        outs = pallas_linear_grouped(
            x2d_pad, self.weight, self.bias2d,
            n_groups=self.n_groups, group_pad=self.group_pad,
        )
        # Lane-aligned slices (start at lane 0 of each group's own tile).
        mu = outs[0][:B, : self.classes]
        if self.wa:
            sigma = outs[1][:B, : self.classes]
            return mu, sigma
        return mu


if __name__ == "__main__":
    key = jax.random.PRNGKey(0)
    k_x, k_p = jax.random.split(key)

    # Small shapes: batch=2, channels=4, spatial=16 -> in_c = 4*16*16 = 1024
    B, C, H, W = 2, 4, 16, 16
    in_c = C * H * W
    classes = 10
    wa = True

    x = jax.random.normal(k_x, (B, C, H, W), jnp.float32)

    model = FlattenPallas(in_c, classes, wa, k_p)
    mu, sigma = model(x)
    jax.block_until_ready((mu, sigma))
    assert mu.shape == (B, classes) and sigma.shape == (B, classes)

    # Pure-JAX reference using the same bf16-quantized operands, f32 compute.
    x2d_q = x.reshape(B, -1).astype(jnp.bfloat16).astype(jnp.float32)
    w_q = model.weight.astype(jnp.float32)
    ref = jnp.dot(x2d_q, w_q, precision=jax.lax.Precision.HIGHEST) + model.bias2d
    gp = model.group_pad
    ref_mu = ref[:, :classes]
    ref_sigma = ref[:, gp: gp + classes]
    assert jnp.allclose(mu, ref_mu, atol=1e-4, rtol=1e-4)
    assert jnp.allclose(sigma, ref_sigma, atol=1e-4, rtol=1e-4)

    print("KERNEL_OK")
</pallas_src>

<mosaic_0001>
module attributes {stable_mosaic.version = 11 : i64} {
  func.func @kernel(%arg0: memref<8x1024xbf16, #tpu.memory_space<vmem>>, %arg1: memref<1024x256xbf16, #tpu.memory_space<vmem>>, %arg2: memref<1x256xf32, #tpu.memory_space<vmem>>, %arg3: memref<8x128xf32, #tpu.memory_space<vmem>>, %arg4: memref<8x128xf32, #tpu.memory_space<vmem>>) attributes {dimension_semantics = [], scalar_prefetch = 0 : i64, scratch_operands = 0 : i64, tpu.core_type = #tpu.core_type<tc>} {
    %c0 = arith.constant 0 : index
    %c0_0 = arith.constant 0 : index
    %0 = vector.load %arg0[%c0, %c0_0] : memref<8x1024xbf16, #tpu.memory_space<vmem>>, vector<8x1024xbf16>
    %c0_1 = arith.constant 0 : index
    %c0_2 = arith.constant 0 : index
    %1 = vector.load %arg1[%c0_1, %c0_2] : memref<1024x256xbf16, #tpu.memory_space<vmem>>, vector<1024x256xbf16>
    %cst = arith.constant dense<0.000000e+00> : vector<8x256xf32>
    %2 = tpu.matmul %0, %1, %cst {dimension_numbers = #tpu.dot_dimension_numbers<[1], [0], [0], [1], [0, 0, 1, 1], [], []>} : vector<8x1024xbf16>, vector<1024x256xbf16>, vector<8x256xf32> -> vector<8x256xf32>
    %c0_3 = arith.constant 0 : index
    %c0_4 = arith.constant 0 : index
    %3 = vector.load %arg2[%c0_3, %c0_4] : memref<1x256xf32, #tpu.memory_space<vmem>>, vector<1x256xf32>
    %4 = vector.broadcast %3 : vector<1x256xf32> to vector<8x256xf32>
    %5 = arith.addf %2, %4 : vector<8x256xf32>
    %6 = vector.extract_strided_slice %5 {offsets = [0, 0], sizes = [8, 128], strides = [1, 1]} : vector<8x256xf32> to vector<8x128xf32>
    %c0_5 = arith.constant 0 : index
    %c0_6 = arith.constant 0 : index
    %7 = vector.load %arg3[%c0_5, %c0_6] : memref<8x128xf32, #tpu.memory_space<vmem>>, vector<8x128xf32>
    tpu.vector_store %arg3[%c0_5, %c0_6], %6 {strides = array<i32>} : memref<8x128xf32, #tpu.memory_space<vmem>>, vector<8x128xf32>,
    %8 = vector.extract_strided_slice %5 {offsets = [0, 128], sizes = [8, 128], strides = [1, 1]} : vector<8x256xf32> to vector<8x128xf32>
    %c0_7 = arith.constant 0 : index
    %c0_8 = arith.constant 0 : index
    %9 = vector.load %arg4[%c0_7, %c0_8] : memref<8x128xf32, #tpu.memory_space<vmem>>, vector<8x128xf32>
    tpu.vector_store %arg4[%c0_7, %c0_8], %8 {strides = array<i32>} : memref<8x128xf32, #tpu.memory_space<vmem>>, vector<8x128xf32>,
    return
  }
}

</mosaic_0001>

<bundles_post_ra>
// kernel: tpu_custom_call.1
= control target key start
LH: loop header
LB: loop body
LE: loop exit
PB: predicated region body
PF: predicated region fallthrough
CT: control target
= control target key end

     0   :  { %10 = vsyncpa [#allocation3], 0  ;;  %s1965_s0 = inlined_call_operand.hbm [shape: bf16[8,1024], index: 0, kind: input, shape index: {}]   ;;  %s1966_s1 = inlined_call_operand.hbm [shape: bf16[1024,256], index: 1, kind: input, shape index: {}]   ;;  %s1967_s2 = inlined_call_operand.hbm [shape: f32[1,256], index: 2, kind: input, shape index: {}]   ;;  %s1968_s3 = inlined_call_operand.hbm [shape: f32[8,128], index: 3, kind: output, shape index: {0}]   ;;  %s1969_s4 = inlined_call_operand.hbm [shape: f32[8,128], index: 4, kind: output, shape index: {1}]  }
   0x1   :  { %11 = vsyncpa [#allocation6], 0 }
   0x2   :  { %12 = vsyncpa [#allocation4], 0  ;;  %s29_s17 = sshll.u32 %s1966_s1, 4  ;;  %s30_s17 = int_to_ptr.hbm [resolvable:$true] %s29_s17 }
   0x3   :  { %13 = vsyncpa [#allocation10], 0  ;;  %s1886_s18 = smov [#allocation5]   ;;  %s19_s22 = sshll.u32 %s1965_s0, 4  ;;  %s20_s22 = int_to_ptr.hbm [resolvable:$true] %s19_s22 }
   0x4   :  { %s31_s19 = sshll.u32 %s1886_s18, 4  ;;  %s1887_s23 = smov 128   ;;  %s32_s19 = int_to_ptr.vmem [resolvable:$true] %s31_s19 }
   0x5   :  { %s1888_s24 = smov 8   ;;  %s1889_s25 = smov [#allocation2]  }
   0x6   :  { %37 = dma.hbm_to_vmem [thread:$0]  %s30_s17, 16384, %s32_s19, [#allocation6], %s1887_s23, %s1887_s23, %s1888_s24  }
   0x7   :  { %s21_s26 = sshll.u32 %s1889_s25, 4  ;;  %s43_s29 = sshll.u32 %s1967_s2, 4  ;;  %s22_s26 = int_to_ptr.vmem [resolvable:$true] %s21_s26  ;;  %s44_s29 = int_to_ptr.hbm [resolvable:$true] %s43_s29 }
   0x8   :  { %24 = dma.hbm_to_vmem [thread:$0]  %s20_s22, 512, %s22_s26, [#allocation3]  }
   0x9   :  { %s1890_s1 = smov [#allocation7]  }
   0xa   :  { %s45_s30 = sshll.u32 %s1890_s1, 4  ;;  %s46_s30 = int_to_ptr.vmem [resolvable:$true] %s45_s30 }
   0xb   :  { %48 = dma.hbm_to_vmem [thread:$0]  %s44_s29, 32, %s46_s30, [#allocation6]  }
   0xc   :  { %1878 = dma.done.wait [#allocation3], 512  }
   0xd   :  { %1879 = vsyncadd [#allocation3], 4294966784 }
   0xe   :  { %1880 = dma.done.wait [#allocation6], 16416  }
   0xf   :  { %1881 = vsyncadd [#allocation6], 4294950880  ;;  %v1169_v0 = vld [vmem:[#allocation5 + $0x70] sm:$0xf]  ;;  %v1638_v1 = vld [vmem:[#allocation5 + $0x74] sm:$0xf0] }
  0x10   :  { %v1233_v2 = vld [vmem:[#allocation5 + $0xf0] sm:$0xf]  ;;  %v1170_v3 = vor.u32 %v1638_v1, %v1169_v0  ;;  %v1654_v4 = vld [vmem:[#allocation5 + $0xf4] sm:$0xf0]  ;;  %v1161_v11 = vld [vmem:[#allocation5 + $0x60] sm:$0xf] }
  0x11   :  { %v1297_v5 = vld [vmem:[#allocation5 + $0x170] sm:$0xf]  ;;  %v1670_v6 = vld [vmem:[#allocation5 + $0x174] sm:$0xf0]  ;;  %v1234_v7 = vor.u32 %v1654_v4, %v1233_v2  ;;  %v1636_v13 = vld [vmem:[#allocation5 + $0x64] sm:$0xf0] }
  0x12   :  { %v1298_v8 = vor.u32 %v1670_v6, %v1297_v5  ;;  %v1361_v9 = vld [vmem:[#allocation5 + $0x1f0] sm:$0xf]  ;;  %v1686_v10 = vld [vmem:[#allocation5 + $0x1f4] sm:$0xf0]  ;;  %867 = vmatpush.bf16.msra.mxu0 %v1170_v3  ;;  %v1225_v14 = vld [vmem:[#allocation5 + $0xe0] sm:$0xf]  ;;  %v1162_v16 = vor.u32 %v1636_v13, %v1161_v11 }
  0x13   :  { %v1362_v12 = vor.u32 %v1686_v10, %v1361_v9  ;;  %v1652_v15 = vld [vmem:[#allocation5 + $0xe4] sm:$0xf0]  ;;  %880 = vmatpush.bf16.msra.mxu1 %v1234_v7  ;;  %v1289_v18 = vld [vmem:[#allocation5 + $0x160] sm:$0xf]  ;;  %v1153_v23 = vld [vmem:[#allocation5 + $0x50] sm:$0xf] }
  0x14   :  { %893 = vmatpush.bf16.msra.mxu2 %v1298_v8  ;;  %v1226_v17 = vor.u32 %v1652_v15, %v1225_v14  ;;  %v1668_v19 = vld [vmem:[#allocation5 + $0x164] sm:$0xf0]  ;;  %v1353_v20 = vld [vmem:[#allocation5 + $0x1e0] sm:$0xf]  ;;  %v1634_v24 = vld [vmem:[#allocation5 + $0x54] sm:$0xf0] }
  0x15   :  { %906 = vmatpush.bf16.msra.mxu3 %v1362_v12  ;;  %v1290_v21 = vor.u32 %v1668_v19, %v1289_v18  ;;  %v1684_v22 = vld [vmem:[#allocation5 + $0x1e4] sm:$0xf0]  ;;  %v1217_v26 = vld [vmem:[#allocation5 + $0xd0] sm:$0xf]  ;;  %v1650_v27 = vld [vmem:[#allocation5 + $0xd4] sm:$0xf0]  ;;  %v1154_v29 = vor.u32 %v1634_v24, %v1153_v23 }
  0x16   :  { %v1354_v25 = vor.u32 %v1684_v22, %v1353_v20  ;;  %v1281_v28 = vld [vmem:[#allocation5 + $0x150] sm:$0xf]  ;;  %868 = vmatpush.bf16.msra.mxu0 %v1162_v16  ;;  %v1666_v30 = vld [vmem:[#allocation5 + $0x154] sm:$0xf0]  ;;  %v1218_v33 = vor.u32 %v1650_v27, %v1217_v26  ;;  %v1145_v35 = vld [vmem:[#allocation5 + $0x40] sm:$0xf] }
  0x17   :  { %v1345_v31 = vld [vmem:[#allocation5 + $0x1d0] sm:$0xf]  ;;  %v1682_v32 = vld [vmem:[#allocation5 + $0x1d4] sm:$0xf0]  ;;  %881 = vmatpush.bf16.msra.mxu1 %v1226_v17  ;;  %v1282_v34 = vor.u32 %v1666_v30, %v1281_v28  ;;  %v1632_v36 = vld [vmem:[#allocation5 + $0x44] sm:$0xf0] }
  0x18   :  { %894 = vmatpush.bf16.msra.mxu2 %v1290_v21  ;;  %v1209_v37 = vld [vmem:[#allocation5 + $0xc0] sm:$0xf]  ;;  %v1346_v38 = vor.u32 %v1682_v32, %v1345_v31  ;;  %v1648_v39 = vld [vmem:[#allocation5 + $0xc4] sm:$0xf0]  ;;  %v1146_v44 = vor.u32 %v1632_v36, %v1145_v35  ;;  %v1137_v47 = vld [vmem:[#allocation5 + $0x30] sm:$0xf] }
  0x19   :  { %907 = vmatpush.bf16.msra.mxu3 %v1354_v25  ;;  %v1273_v40 = vld [vmem:[#allocation5 + $0x140] sm:$0xf]  ;;  %v1664_v41 = vld [vmem:[#allocation5 + $0x144] sm:$0xf0]  ;;  %v1210_v45 = vor.u32 %v1648_v39, %v1209_v37  ;;  %v1630_v48 = vld [vmem:[#allocation5 + $0x34] sm:$0xf0] }
  0x1a   :  { %v1337_v42 = vld [vmem:[#allocation5 + $0x1c0] sm:$0xf]  ;;  %v1680_v43 = vld [vmem:[#allocation5 + $0x1c4] sm:$0xf0]  ;;  %869 = vmatpush.bf16.msra.mxu0 %v1154_v29  ;;  %v1274_v46 = vor.u32 %v1664_v41, %v1273_v40  ;;  %v1201_v49 = vld [vmem:[#allocation5 + $0xb0] sm:$0xf]  ;;  %v1138_v56 = vor.u32 %v1630_v48, %v1137_v47 }
  0x1b   :  { %882 = vmatpush.bf16.msra.mxu1 %v1218_v33  ;;  %v1338_v50 = vor.u32 %v1680_v43, %v1337_v42  ;;  %v1646_v51 = vld [vmem:[#allocation5 + $0xb4] sm:$0xf0]  ;;  %v1265_v52 = vld [vmem:[#allocation5 + $0x130] sm:$0xf]  ;;  %v1129_v59 = vld [vmem:[#allocation5 + $0x20] sm:$0xf] }
  0x1c   :  { %895 = vmatpush.bf16.msra.mxu2 %v1282_v34  ;;  %v1662_v53 = vld [vmem:[#allocation5 + $0x134] sm:$0xf0]  ;;  %v1329_v54 = vld [vmem:[#allocation5 + $0x1b0] sm:$0xf]  ;;  %v1202_v57 = vor.u32 %v1646_v51, %v1201_v49  ;;  %v1628_v60 = vld [vmem:[#allocation5 + $0x24] sm:$0xf0] }
  0x1d   :  { %908 = vmatpush.bf16.msra.mxu3 %v1346_v38  ;;  %v1678_v55 = vld [vmem:[#allocation5 + $0x1b4] sm:$0xf0]  ;;  %v1266_v58 = vor.u32 %v1662_v53, %v1265_v52  ;;  %v1193_v61 = vld [vmem:[#allocation5 + $0xa0] sm:$0xf]  ;;  %v1644_v63 = vld [vmem:[#allocation5 + $0xa4] sm:$0xf0]  ;;  %v1130_v4 = vor.u32 %v1628_v60, %v1129_v59 }
  0x1e   :  { %870 = vmatpush.bf16.msra.mxu0 %v1146_v44  ;;  %v1330_v62 = vor.u32 %v1678_v55, %v1329_v54  ;;  %v1257_v0 = vld [vmem:[#allocation5 + $0x120] sm:$0xf]  ;;  %v1660_v1 = vld [vmem:[#allocation5 + $0x124] sm:$0xf0]  ;;  %v1194_v5 = vor.u32 %v1644_v63, %v1193_v61  ;;  %v1121_v7 = vld [vmem:[#allocation5 + $0x10] sm:$0xf] }
  0x1f   :  { %883 = vmatpush.bf16.msra.mxu1 %v1210_v45  ;;  %v1321_v2 = vld [vmem:[#allocation5 + $0x1a0] sm:$0xf]  ;;  %v1676_v3 = vld [vmem:[#allocation5 + $0x1a4] sm:$0xf0]  ;;  %v1258_v6 = vor.u32 %v1660_v1, %v1257_v0  ;;  %v1626_v8 = vld [vmem:[#allocation5 + $0x14] sm:$0xf0] }
  0x20   :  { %896 = vmatpush.bf16.msra.mxu2 %v1274_v46  ;;  %v1185_v9 = vld [vmem:[#allocation5 + $0x90] sm:$0xf]  ;;  %v1322_v10 = vor.u32 %v1676_v3, %v1321_v2  ;;  %v1642_v11 = vld [vmem:[#allocation5 + $0x94] sm:$0xf0]  ;;  %v1122_v16 = vor.u32 %v1626_v8, %v1121_v7  ;;  %v1113_v17 = vld [vmem:[#allocation5] sm:$0xf] }
  0x21   :  { %909 = vmatpush.bf16.msra.mxu3 %v1338_v50  ;;  %v1249_v12 = vld [vmem:[#allocation5 + $0x110] sm:$0xf]  ;;  %v1658_v13 = vld [vmem:[#allocation5 + $0x114] sm:$0xf0]  ;;  %v1624_v18 = vld [vmem:[#allocation5 + $0x4] sm:$0xf0]  ;;  %v1186_v19 = vor.u32 %v1642_v11, %v1185_v9 }
  0x22   :  { %871 = vmatpush.bf16.msra.mxu0 %v1138_v56  ;;  %v1313_v14 = vld [vmem:[#allocation5 + $0x190] sm:$0xf]  ;;  %v1674_v15 = vld [vmem:[#allocation5 + $0x194] sm:$0xf0]  ;;  %v1250_v20 = vor.u32 %v1658_v13, %v1249_v12  ;;  %v1177_v21 = vld [vmem:[#allocation5 + $0x80] sm:$0xf]  ;;  %v1114_v31 = vor.u32 %v1624_v18, %v1113_v17 }
  0x23   :  { %884 = vmatpush.bf16.msra.mxu1 %v1202_v57  ;;  %v1640_v22 = vld [vmem:[#allocation5 + $0x84] sm:$0xf0]  ;;  %v1241_v23 = vld [vmem:[#allocation5 + $0x100] sm:$0xf]  ;;  %v1314_v24 = vor.u32 %v1674_v15, %v1313_v14  ;;  %v1425_v28 = vld [vmem:[#allocation5 + $0x270] sm:$0xf] }
  0x24   :  { %897 = vmatpush.bf16.msra.mxu2 %v1266_v58  ;;  %v1656_v25 = vld [vmem:[#allocation5 + $0x104] sm:$0xf0]  ;;  %v1305_v26 = vld [vmem:[#allocation5 + $0x180] sm:$0xf]  ;;  %v1702_v29 = vld [vmem:[#allocation5 + $0x274] sm:$0xf0]  ;;  %v1178_v35 = vor.u32 %v1640_v22, %v1177_v21 }
  0x25   :  { %910 = vmatpush.bf16.msra.mxu3 %v1330_v62  ;;  %v1672_v27 = vld [vmem:[#allocation5 + $0x184] sm:$0xf0]  ;;  %v1489_v30 = vld [vmem:[#allocation5 + $0x2f0] sm:$0xf]  ;;  %v1718_v32 = vld [vmem:[#allocation5 + $0x2f4] sm:$0xf0]  ;;  %v1242_v36 = vor.u32 %v1656_v25, %v1241_v23  ;;  %v1426_v40 = vor.u32 %v1702_v29, %v1425_v28 }
  0x26   :  { %872 = vmatpush.bf16.msra.mxu0 %v1130_v4  ;;  %v1553_v33 = vld [vmem:[#allocation5 + $0x370] sm:$0xf]  ;;  %v1734_v34 = vld [vmem:[#allocation5 + $0x374] sm:$0xf0]  ;;  %v1306_v39 = vor.u32 %v1672_v27, %v1305_v26  ;;  %v1490_v41 = vor.u32 %v1718_v32, %v1489_v30  ;;  %v1417_v43 = vld [vmem:[#allocation5 + $0x260] sm:$0xf] }
  0x27   :  { %885 = vmatpush.bf16.msra.mxu1 %v1194_v5  ;;  %v1617_v37 = vld [vmem:[#allocation5 + $0x3f0] sm:$0xf]  ;;  %v1750_v38 = vld [vmem:[#allocation5 + $0x3f4] sm:$0xf0]  ;;  %v1554_v42 = vor.u32 %v1734_v34, %v1553_v33  ;;  %v1700_v44 = vld [vmem:[#allocation5 + $0x264] sm:$0xf0] }
  0x28   :  { %898 = vmatpush.bf16.msra.mxu2 %v1258_v6  ;;  %v1481_v45 = vld [vmem:[#allocation5 + $0x2e0] sm:$0xf]  ;;  %v1618_v46 = vor.u32 %v1750_v38, %v1617_v37  ;;  %v1716_v47 = vld [vmem:[#allocation5 + $0x2e4] sm:$0xf0]  ;;  %v1418_v52 = vor.u32 %v1700_v44, %v1417_v43  ;;  %v1409_v53 = vld [vmem:[#allocation5 + $0x250] sm:$0xf] }
  0x29   :  { %911 = vmatpush.bf16.msra.mxu3 %v1322_v10  ;;  %v1545_v48 = vld [vmem:[#allocation5 + $0x360] sm:$0xf]  ;;  %v1732_v49 = vld [vmem:[#allocation5 + $0x364] sm:$0xf0]  ;;  %v1482_v54 = vor.u32 %v1716_v47, %v1481_v45  ;;  %v1698_v56 = vld [vmem:[#allocation5 + $0x254] sm:$0xf0] }
  0x2a   :  { %873 = vmatpush.bf16.msra.mxu0 %v1122_v16  ;;  %v1609_v50 = vld [vmem:[#allocation5 + $0x3e0] sm:$0xf]  ;;  %v1748_v51 = vld [vmem:[#allocation5 + $0x3e4] sm:$0xf0]  ;;  %v1546_v55 = vor.u32 %v1732_v49, %v1545_v48  ;;  %v1473_v57 = vld [vmem:[#allocation5 + $0x2d0] sm:$0xf]  ;;  %v1410_v3 = vor.u32 %v1698_v56, %v1409_v53 }
  0x2b   :  { %886 = vmatpush.bf16.msra.mxu1 %v1186_v19  ;;  %v62_v58 = vld [vmem:[#allocation2 + $0x8] sm:$0xff]  ;;  %v1610_v59 = vor.u32 %v1748_v51, %v1609_v50  ;;  %v1714_v60 = vld [vmem:[#allocation5 + $0x2d4] sm:$0xf0]  ;;  %v1537_v61 = vld [vmem:[#allocation5 + $0x350] sm:$0xf]  ;;  %s1891_s0 = smov [#allocation8]  }
  0x2c   :  { %899 = vmatpush.bf16.msra.mxu2 %v1250_v20  ;;  %v1730_v62 = vld [vmem:[#allocation5 + $0x354] sm:$0xf0]  ;;  %v205_v63 = vunpack.c.l.b16 %v62_v58  ;;  %v206_v0 = vunpack.c.h.b16 %v62_v58  ;;  %v1601_v1 = vld [vmem:[#allocation5 + $0x3d0] sm:$0xf]  ;;  %v61_v5 = vld [vmem:[#allocation2] sm:$0xff]  ;;  %v1474_v7 = vor.u32 %v1714_v60, %v1473_v57  ;;  %s1082_s2 = sshll.u32 %s1891_s0, 4  ;;  %s1083_s2 = int_to_ptr.vmem [resolvable:$true] %s1082_s2 }
  0x2d   :  { %912 = vmatpush.bf16.msra.mxu3 %v1314_v24  ;;  %v1746_v2 = vld [vmem:[#allocation5 + $0x3d4] sm:$0xf0]  ;;  %v1538_v8 = vor.u32 %v1730_v62, %v1537_v61  ;;  %v1401_v9 = vld [vmem:[#allocation5 + $0x240] sm:$0xf]  ;;  %v1696_v10 = vld [vmem:[#allocation5 + $0x244] sm:$0xf0]  ;;  %v203_v12 = vunpack.c.l.b16 %v61_v5  ;;  %v204_v13 = vunpack.c.h.b16 %v61_v5 }
  0x2e   :  { %874 = vmatpush.bf16.msra.mxu0 %v1114_v31  ;;  %v1927_v4 = vpack.c.b16 %v205_v63, %v205_v63  ;;  %v1929_v6 = vpack.c.b16 %v206_v0, %v206_v0  ;;  %v1465_v11 = vld [vmem:[#allocation5 + $0x2c0] sm:$0xf]  ;;  %v1602_v14 = vor.u32 %v1746_v2, %v1601_v1  ;;  %v1712_v15 = vld [vmem:[#allocation5 + $0x2c4] sm:$0xf0]  ;;  %v1402_v22 = vor.u32 %v1696_v10, %v1401_v9  ;;  %v1393_v25 = vld [vmem:[#allocation5 + $0x230] sm:$0xf] }
  0x2f   :  { %887 = vmatpush.bf16.msra.mxu1 %v1178_v35  ;;  %v1529_v16 = vld [vmem:[#allocation5 + $0x340] sm:$0xf]  ;;  %v1728_v17 = vld [vmem:[#allocation5 + $0x344] sm:$0xf0]  ;;  %v1932_v20 = vpack.c.b16 %v203_v12, %v203_v12  ;;  %v1935_v21 = vpack.c.b16 %v204_v13, %v204_v13  ;;  %v1466_v23 = vor.u32 %v1712_v15, %v1465_v11  ;;  %v1694_v26 = vld [vmem:[#allocation5 + $0x234] sm:$0xf0] }
  0x30   :  { %900 = vmatpush.bf16.msra.mxu2 %v1242_v36  ;;  %v1593_v18 = vld [vmem:[#allocation5 + $0x3c0] sm:$0xf]  ;;  %v1744_v19 = vld [vmem:[#allocation5 + $0x3c4] sm:$0xf0]  ;;  %v1530_v24 = vor.u32 %v1728_v17, %v1529_v16  ;;  %v1457_v27 = vld [vmem:[#allocation5 + $0x2b0] sm:$0xf]  ;;  %v1394_v34 = vor.u32 %v1694_v26, %v1393_v25 }
  0x31   :  { %913 = vmatpush.bf16.msra.mxu3 %v1306_v39  ;;  %v1594_v28 = vor.u32 %v1744_v19, %v1593_v18  ;;  %v1710_v29 = vld [vmem:[#allocation5 + $0x2b4] sm:$0xf0]  ;;  %v1521_v30 = vld [vmem:[#allocation5 + $0x330] sm:$0xf]  ;;  %875 = vmatmul.bf16.vlgmr.msra.gmra.mxu0 %v1932_v20  ;;  %v1385_v37 = vld [vmem:[#allocation5 + $0x220] sm:$0xf] }
  0x32   :  { %919 = vmatpush.bf16.msrb.mxu0 %v1426_v40  ;;  %v1726_v31 = vld [vmem:[#allocation5 + $0x334] sm:$0xf0]  ;;  %v1585_v32 = vld [vmem:[#allocation5 + $0x3b0] sm:$0xf]  ;;  %888 = vmatmul.bf16.vlgmr.msra.gmra.mxu1 %v1935_v21  ;;  %v1458_v35 = vor.u32 %v1710_v29, %v1457_v27  ;;  %v1692_v38 = vld [vmem:[#allocation5 + $0x224] sm:$0xf0] }
  0x33   :  { %932 = vmatpush.bf16.msrb.mxu1 %v1490_v41  ;;  %901 = vmatmul.bf16.vlgmr.msra.gmra.mxu2 %v1927_v4  ;;  %v1742_v33 = vld [vmem:[#allocation5 + $0x3b4] sm:$0xf0]  ;;  %v1522_v36 = vor.u32 %v1726_v31, %v1521_v30  ;;  %v1449_v39 = vld [vmem:[#allocation5 + $0x2a0] sm:$0xf]  ;;  %v1708_v41 = vld [vmem:[#allocation5 + $0x2a4] sm:$0xf0] }
  0x34   :  { %945 = vmatpush.bf16.msrb.mxu2 %v1554_v42  ;;  %914 = vmatmul.bf16.vlgmr.msra.gmra.mxu3 %v1929_v6  ;;  %v1586_v40 = vor.u32 %v1742_v33, %v1585_v32  ;;  %v1513_v42 = vld [vmem:[#allocation5 + $0x320] sm:$0xf]  ;;  %v1724_v43 = vld [vmem:[#allocation5 + $0x324] sm:$0xf0]  ;;  %v1450_v47 = vor.u32 %v1708_v41, %v1449_v39  ;;  %v1377_v49 = vld [vmem:[#allocation5 + $0x210] sm:$0xf] }
  0x35   :  { %958 = vmatpush.bf16.msrb.mxu3 %v1618_v46  ;;  %v1577_v44 = vld [vmem:[#allocation5 + $0x3a0] sm:$0xf]  ;;  %v1740_v45 = vld [vmem:[#allocation5 + $0x3a4] sm:$0xf0]  ;;  %v1386_v46 = vor.u32 %v1692_v38, %v1385_v37  ;;  %v1514_v48 = vor.u32 %v1724_v43, %v1513_v42  ;;  %v1690_v50 = vld [vmem:[#allocation5 + $0x214] sm:$0xf0] }
  0x36   :  { %920 = vmatpush.bf16.msrb.mxu0 %v1418_v52  ;;  %v1441_v51 = vld [vmem:[#allocation5 + $0x290] sm:$0xf]  ;;  %v1578_v52 = vor.u32 %v1740_v45, %v1577_v44  ;;  %v1706_v53 = vld [vmem:[#allocation5 + $0x294] sm:$0xf0]  ;;  %v1369_v58 = vld [vmem:[#allocation5 + $0x200] sm:$0xf] }
  0x37   :  { %933 = vmatpush.bf16.msrb.mxu1 %v1482_v54  ;;  %v1505_v54 = vld [vmem:[#allocation5 + $0x310] sm:$0xf]  ;;  %v1738_v57 = vld [vmem:[#allocation5 + $0x394] sm:$0xf0]  ;;  %v1688_v60 = vld [vmem:[#allocation5 + $0x204] sm:$0xf0]  ;;  %v1442_v63 = vor.u32 %v1706_v53, %v1441_v51 }
  0x38   :  { %946 = vmatpush.bf16.msrb.mxu2 %v1546_v55  ;;  %v1722_v55 = vld [vmem:[#allocation5 + $0x314] sm:$0xf0]  ;;  %v1569_v56 = vld [vmem:[#allocation5 + $0x390] sm:$0xf]  ;;  %v1433_v61 = vld [vmem:[#allocation5 + $0x280] sm:$0xf]  ;;  %v1370_v13 = vor.u32 %v1688_v60, %v1369_v58 }
  0x39   :  { %959 = vmatpush.bf16.msrb.mxu3 %v1610_v59  ;;  %v1378_v59 = vor.u32 %v1690_v50, %v1377_v49  ;;  %v1704_v62 = vld [vmem:[#allocation5 + $0x284] sm:$0xf0]  ;;  %v1506_v0 = vor.u32 %v1722_v55, %v1505_v54  ;;  %v1497_v1 = vld [vmem:[#allocation5 + $0x300] sm:$0xf]  ;;  %v1570_v5 = vor.u32 %v1738_v57, %v1569_v56  ;;  %v63_v9 = vld [vmem:[#allocation2 + $0x10] sm:$0xff]  ;;  %s1084_s7 = sshll.u32 %s1968_s3, 4  ;;  %s1085_s7 = int_to_ptr.hbm [resolvable:$true] %s1084_s7 }
  0x3a   :  { %921 = vmatpush.bf16.msrb.mxu0 %v1410_v3  ;;  %v1720_v2 = vld [vmem:[#allocation5 + $0x304] sm:$0xf0]  ;;  %v64_v3 = vld [vmem:[#allocation2 + $0x18] sm:$0xff]  ;;  %v1637_v10 = vld [vmem:[#allocation5 + $0x74] sm:$0xf]  ;;  %v1434_v18 = vor.u32 %v1704_v62, %v1433_v61  ;;  %s1892_s3 = smov [#allocation9]  }
  0x3b   :  { %934 = vmatpush.bf16.msrb.mxu1 %v1474_v7  ;;  %v1561_v7 = vld [vmem:[#allocation5 + $0x380] sm:$0xf]  ;;  %v1171_v11 = vld [vmem:[#allocation5 + $0x78] sm:$0xf0]  ;;  %v1653_v12 = vld [vmem:[#allocation5 + $0xf4] sm:$0xf]  ;;  %v209_v17 = vunpack.c.l.b16 %v64_v3  ;;  %v1498_v19 = vor.u32 %v1720_v2, %v1497_v1  ;;  %v210_v25 = vunpack.c.h.b16 %v64_v3 }
  0x3c   :  { %947 = vmatpush.bf16.msrb.mxu2 %v1538_v8  ;;  %v1736_v8 = vld [vmem:[#allocation5 + $0x384] sm:$0xf0]  ;;  %v1669_v15 = vld [vmem:[#allocation5 + $0x174] sm:$0xf]  ;;  %v1299_v16 = vld [vmem:[#allocation5 + $0x178] sm:$0xf0]  ;;  %v1174_v27 = vor.u32 %v1637_v10, %v1171_v11 }
  0x3d   :  { %960 = vmatpush.bf16.msrb.mxu3 %v1602_v14  ;;  %v1235_v14 = vld [vmem:[#allocation5 + $0xf8] sm:$0xf0]  ;;  %v1562_v26 = vor.u32 %v1736_v8, %v1561_v7  ;;  %v1302_v30 = vor.u32 %v1669_v15, %v1299_v16  ;;  %v1635_v31 = vld [vmem:[#allocation5 + $0x64] sm:$0xf]  ;;  %v1163_v32 = vld [vmem:[#allocation5 + $0x68] sm:$0xf0]  ;;  %v1939_v38 = vpack.c.b16 %v209_v17, %v209_v17  ;;  %v1943_v42 = vpack.c.b16 %v210_v25, %v210_v25 }
  0x3e   :  { %922 = vmatpush.bf16.msrb.mxu0 %v1402_v22  ;;  %v1685_v22 = vld [vmem:[#allocation5 + $0x1f4] sm:$0xf]  ;;  %v1238_v29 = vor.u32 %v1653_v12, %v1235_v14  ;;  %v1651_v33 = vld [vmem:[#allocation5 + $0xe4] sm:$0xf]  ;;  %v1291_v37 = vld [vmem:[#allocation5 + $0x168] sm:$0xf0]  ;;  %v1166_v43 = vor.u32 %v1635_v31, %v1163_v32 }
  0x3f   :  { %935 = vmatpush.bf16.msrb.mxu1 %v1466_v23  ;;  %v1363_v23 = vld [vmem:[#allocation5 + $0x1f8] sm:$0xf0]  ;;  %v1683_v39 = vld [vmem:[#allocation5 + $0x1e4] sm:$0xf]  ;;  %v1649_v49 = vld [vmem:[#allocation5 + $0xd4] sm:$0xf] }
  0x40   :  { %948 = vmatpush.bf16.msrb.mxu2 %v1530_v24  ;;  %v207_v24 = vunpack.c.l.b16 %v63_v9  ;;  %v1219_v51 = vld [vmem:[#allocation5 + $0xd8] sm:$0xf0]  ;;  %v1681_v54 = vld [vmem:[#allocation5 + $0x1d4] sm:$0xf]  ;;  %v1147_v60 = vld [vmem:[#allocation5 + $0x48] sm:$0xf0] }
  0x41   :  { %961 = vmatpush.bf16.msrb.mxu3 %v1594_v28  ;;  %v208_v28 = vunpack.c.h.b16 %v63_v9  ;;  %v1283_v53 = vld [vmem:[#allocation5 + $0x158] sm:$0xf0]  ;;  %v1222_v57 = vor.u32 %v1649_v49, %v1219_v51  ;;  %v1647_v61 = vld [vmem:[#allocation5 + $0xc4] sm:$0xf]  ;;  %v1275_v1 = vld [vmem:[#allocation5 + $0x148] sm:$0xf0] }
  0x42   :  { %923 = vmatpush.bf16.msrb.mxu0 %v1394_v34  ;;  %v1366_v34 = vor.u32 %v1685_v22, %v1363_v23  ;;  %v1941_v41 = vpack.c.b16 %v207_v24, %v207_v24  ;;  %v1347_v55 = vld [vmem:[#allocation5 + $0x1d8] sm:$0xf0]  ;;  %v1679_v2 = vld [vmem:[#allocation5 + $0x1c4] sm:$0xf]  ;;  %v1339_v3 = vld [vmem:[#allocation5 + $0x1c8] sm:$0xf0] }
  0x43   :  { %936 = vmatpush.bf16.msrb.mxu1 %v1458_v35  ;;  %v1227_v35 = vld [vmem:[#allocation5 + $0xe8] sm:$0xf0]  ;;  %v1945_v44 = vpack.c.b16 %v208_v28, %v208_v28  ;;  %v1350_v62 = vor.u32 %v1681_v54, %v1347_v55  ;;  %v1629_v9 = vld [vmem:[#allocation5 + $0x34] sm:$0xf]  ;;  %v1139_v10 = vld [vmem:[#allocation5 + $0x38] sm:$0xf0]  ;;  %v1342_v12 = vor.u32 %v1679_v2, %v1339_v3 }
  0x44   :  { %949 = vmatpush.bf16.msrb.mxu2 %v1522_v36  ;;  %v1667_v36 = vld [vmem:[#allocation5 + $0x164] sm:$0xf]  ;;  %v1230_v45 = vor.u32 %v1651_v33, %v1227_v35  ;;  %v1645_v11 = vld [vmem:[#allocation5 + $0xb4] sm:$0xf]  ;;  %v1267_v15 = vld [vmem:[#allocation5 + $0x138] sm:$0xf0] }
  0x45   :  { %962 = vmatpush.bf16.msrb.mxu3 %v1586_v40  ;;  %v1355_v40 = vld [vmem:[#allocation5 + $0x1e8] sm:$0xf0]  ;;  %v1661_v14 = vld [vmem:[#allocation5 + $0x134] sm:$0xf]  ;;  %v1331_v17 = vld [vmem:[#allocation5 + $0x1b8] sm:$0xf0] }
  0x46   :  { %924 = vmatpush.bf16.msrb.mxu0 %v1386_v46  ;;  %v1294_v46 = vor.u32 %v1667_v36, %v1291_v37  ;;  %v1358_v50 = vor.u32 %v1683_v39, %v1355_v40  ;;  %v1677_v16 = vld [vmem:[#allocation5 + $0x1b4] sm:$0xf]  ;;  %v1270_v22 = vor.u32 %v1661_v14, %v1267_v15  ;;  %v1627_v23 = vld [vmem:[#allocation5 + $0x24] sm:$0xf]  ;;  %v1131_v24 = vld [vmem:[#allocation5 + $0x28] sm:$0xf0] }
  0x47   :  { %937 = vmatpush.bf16.msrb.mxu1 %v1450_v47  ;;  %v1633_v47 = vld [vmem:[#allocation5 + $0x54] sm:$0xf]  ;;  %v1643_v25 = vld [vmem:[#allocation5 + $0xa4] sm:$0xf]  ;;  %v1323_v31 = vld [vmem:[#allocation5 + $0x1a8] sm:$0xf0]  ;;  %v1134_v32 = vor.u32 %v1627_v23, %v1131_v24 }
  0x48   :  { %950 = vmatpush.bf16.msrb.mxu2 %v1514_v48  ;;  %v1155_v48 = vld [vmem:[#allocation5 + $0x58] sm:$0xf0]  ;;  %v1659_v28 = vld [vmem:[#allocation5 + $0x124] sm:$0xf]  ;;  %v1625_v35 = vld [vmem:[#allocation5 + $0x14] sm:$0xf] }
  0x49   :  { %963 = vmatpush.bf16.msrb.mxu3 %v1578_v52  ;;  %v1665_v52 = vld [vmem:[#allocation5 + $0x154] sm:$0xf]  ;;  %v1158_v56 = vor.u32 %v1633_v47, %v1155_v48  ;;  %v1123_v36 = vld [vmem:[#allocation5 + $0x18] sm:$0xf0]  ;;  %v1623_v49 = vld [vmem:[#allocation5 + $0x4] sm:$0xf] }
  0x4a   :  { %925 = vmatpush.bf16.msrb.mxu0 %v1378_v59  ;;  %v1286_v58 = vor.u32 %v1665_v52, %v1283_v53  ;;  %v1631_v59 = vld [vmem:[#allocation5 + $0x44] sm:$0xf]  ;;  %v1641_v37 = vld [vmem:[#allocation5 + $0x94] sm:$0xf]  ;;  %v1187_v40 = vld [vmem:[#allocation5 + $0x98] sm:$0xf0]  ;;  %v1126_v48 = vor.u32 %v1625_v35, %v1123_v36 }
  0x4b   :  { %938 = vmatpush.bf16.msrb.mxu1 %v1442_v63  ;;  %v1211_v63 = vld [vmem:[#allocation5 + $0xc8] sm:$0xf0]  ;;  %v1315_v47 = vld [vmem:[#allocation5 + $0x198] sm:$0xf0]  ;;  %v1190_v51 = vor.u32 %v1641_v37, %v1187_v40  ;;  %v1639_v53 = vld [vmem:[#allocation5 + $0x84] sm:$0xf] }
  0x4c   :  { %951 = vmatpush.bf16.msrb.mxu2 %v1506_v0  ;;  %v1663_v0 = vld [vmem:[#allocation5 + $0x144] sm:$0xf]  ;;  %v1214_v7 = vor.u32 %v1647_v61, %v1211_v63  ;;  %v1179_v54 = vld [vmem:[#allocation5 + $0x88] sm:$0xf0]  ;;  %v1427_v61 = vld [vmem:[#allocation5 + $0x278] sm:$0xf0] }
  0x4d   :  { %964 = vmatpush.bf16.msrb.mxu3 %v1570_v5  ;;  %v1150_v5 = vor.u32 %v1631_v59, %v1147_v60  ;;  %v1278_v8 = vor.u32 %v1663_v0, %v1275_v1  ;;  %v1655_v55 = vld [vmem:[#allocation5 + $0x104] sm:$0xf]  ;;  %v1307_v59 = vld [vmem:[#allocation5 + $0x188] sm:$0xf0]  ;;  %v1701_v60 = vld [vmem:[#allocation5 + $0x274] sm:$0xf]  ;;  %v1182_v3 = vor.u32 %v1639_v53, %v1179_v54 }
  0x4e   :  { %926 = vmatpush.bf16.msrb.mxu0 %v1370_v13  ;;  %v1203_v13 = vld [vmem:[#allocation5 + $0xb8] sm:$0xf0]  ;;  %v1733_v1 = vld [vmem:[#allocation5 + $0x374] sm:$0xf]  ;;  %v1419_v14 = vld [vmem:[#allocation5 + $0x268] sm:$0xf0] }
  0x4f   :  { %939 = vmatpush.bf16.msrb.mxu1 %v1434_v18  ;;  %v1142_v18 = vor.u32 %v1629_v9, %v1139_v10  ;;  %v1491_v0 = vld [vmem:[#allocation5 + $0x2f8] sm:$0xf0]  ;;  %v1430_v10 = vor.u32 %v1701_v60, %v1427_v61  ;;  %v1715_v15 = vld [vmem:[#allocation5 + $0x2e4] sm:$0xf]  ;;  %v1611_v23 = vld [vmem:[#allocation5 + $0x3e8] sm:$0xf0] }
  0x50   :  { %952 = vmatpush.bf16.msrb.mxu2 %v1498_v19  ;;  %v1206_v19 = vor.u32 %v1645_v11, %v1203_v13  ;;  %v1555_v2 = vld [vmem:[#allocation5 + $0x378] sm:$0xf0]  ;;  %v1699_v13 = vld [vmem:[#allocation5 + $0x264] sm:$0xf]  ;;  %v1709_v53 = vld [vmem:[#allocation5 + $0x2b4] sm:$0xf] }
  0x51   :  { %965 = vmatpush.bf16.msrb.mxu3 %v1562_v26  ;;  %927 = vmatmul.bf16.vlgmr.msrb.gmra.mxu0 %v1941_v41  ;;  %v1334_v26 = vor.u32 %v1677_v16, %v1331_v17  ;;  %v1483_v17 = vld [vmem:[#allocation5 + $0x2e8] sm:$0xf0]  ;;  %v1422_v24 = vor.u32 %v1699_v13, %v1419_v14  ;;  %v1603_v35 = vld [vmem:[#allocation5 + $0x3d8] sm:$0xf0]  ;;  %v1695_v40 = vld [vmem:[#allocation5 + $0x244] sm:$0xf] }
  0x52   :  { %971 = vmatpush.bf16.msra.mxu0 %v1174_v27  ;;  %940 = vmatmul.bf16.vlgmr.msrb.gmra.mxu1 %v1945_v44  ;;  %v1195_v27 = vld [vmem:[#allocation5 + $0xa8] sm:$0xf0]  ;;  %v1689_v13 = vld [vmem:[#allocation5 + $0x214] sm:$0xf]  ;;  %v1379_v14 = vld [vmem:[#allocation5 + $0x218] sm:$0xf0] }
  0x53   :  { %984 = vmatpush.bf16.msra.mxu1 %v1238_v29  ;;  %953 = vmatmul.bf16.vlgmr.msrb.gmra.mxu2 %v1939_v38  ;;  %v1259_v29 = vld [vmem:[#allocation5 + $0x128] sm:$0xf0]  ;;  %v1198_v33 = vor.u32 %v1643_v25, %v1195_v27  ;;  %v1486_v25 = vor.u32 %v1715_v15, %v1483_v17  ;;  %v1697_v27 = vld [vmem:[#allocation5 + $0x254] sm:$0xf]  ;;  %v1443_v17 = vld [vmem:[#allocation5 + $0x298] sm:$0xf0] }
  0x54   :  { %997 = vmatpush.bf16.msra.mxu2 %v1302_v30  ;;  %966 = vmatmul.bf16.vlgmr.msrb.gmra.mxu3 %v1943_v42  ;;  %v1675_v30 = vld [vmem:[#allocation5 + $0x1a4] sm:$0xf]  ;;  %v1705_v15 = vld [vmem:[#allocation5 + $0x294] sm:$0xf]  ;;  %s1093_s8 = sshll.u32 %s1892_s3, 4  ;;  %s1095_s11 = sshll.u32 %s1969_s4, 4  ;;  %s1094_s8 = int_to_ptr.vmem [resolvable:$true] %s1093_s8  ;;  %s1096_s11 = int_to_ptr.hbm [resolvable:$true] %s1095_s11 }
  0x55   :  { %1010 = vmatpush.bf16.msra.mxu3 %v1366_v34  ;;  %v1262_v34 = vor.u32 %v1659_v28, %v1259_v29  ;;  %v1326_v39 = vor.u32 %v1675_v30, %v1323_v31  ;;  %v1411_v28 = vld [vmem:[#allocation5 + $0x258] sm:$0xf0]  ;;  %v1713_v29 = vld [vmem:[#allocation5 + $0x2d4] sm:$0xf] }
  0x56   :  { %972 = vmatpush.bf16.msra.mxu0 %v1166_v43  ;;  %v1657_v43 = vld [vmem:[#allocation5 + $0x114] sm:$0xf]  ;;  %v1475_v31 = vld [vmem:[#allocation5 + $0x2d8] sm:$0xf0]  ;;  %v1414_v36 = vor.u32 %v1697_v27, %v1411_v28  ;;  %v1687_v27 = vld [vmem:[#allocation5 + $0x204] sm:$0xf] }
  0x57   :  { %985 = vmatpush.bf16.msra.mxu1 %v1230_v45  ;;  %v1251_v45 = vld [vmem:[#allocation5 + $0x118] sm:$0xf0]  ;;  %v1478_v37 = vor.u32 %v1713_v29, %v1475_v31  ;;  %v1371_v28 = vld [vmem:[#allocation5 + $0x208] sm:$0xf0]  ;;  %v1703_v29 = vld [vmem:[#allocation5 + $0x284] sm:$0xf] }
  0x58   :  { %998 = vmatpush.bf16.msra.mxu2 %v1294_v46  ;;  %v1673_v46 = vld [vmem:[#allocation5 + $0x194] sm:$0xf]  ;;  %v1254_v52 = vor.u32 %v1657_v43, %v1251_v45  ;;  %v1403_v43 = vld [vmem:[#allocation5 + $0x248] sm:$0xf0] }
  0x59   :  { %1011 = vmatpush.bf16.msra.mxu3 %v1358_v50  ;;  %v1115_v50 = vld [vmem:[#allocation5 + $0x8] sm:$0xf0] }
  0x5a   :  { %973 = vmatpush.bf16.msra.mxu0 %v1158_v56  ;;  %v1318_v56 = vor.u32 %v1673_v46, %v1315_v47  ;;  %v1118_v63 = vor.u32 %v1623_v49, %v1115_v50  ;;  %v1467_v46 = vld [vmem:[#allocation5 + $0x2c8] sm:$0xf0]  ;;  %v1727_v47 = vld [vmem:[#allocation5 + $0x344] sm:$0xf] }
  0x5b   :  { %986 = vmatpush.bf16.msra.mxu1 %v1222_v57  ;;  %v1243_v57 = vld [vmem:[#allocation5 + $0x108] sm:$0xf0] }
  0x5c   :  { %999 = vmatpush.bf16.msra.mxu2 %v1286_v58  ;;  %v1671_v58 = vld [vmem:[#allocation5 + $0x184] sm:$0xf]  ;;  %v1595_v49 = vld [vmem:[#allocation5 + $0x3c8] sm:$0xf0] }
  0x5d   :  { %1012 = vmatpush.bf16.msra.mxu3 %v1350_v62  ;;  %v1717_v62 = vld [vmem:[#allocation5 + $0x2f4] sm:$0xf]  ;;  %v1310_v9 = vor.u32 %v1671_v58, %v1307_v59  ;;  %v1587_v59 = vld [vmem:[#allocation5 + $0x3b8] sm:$0xf0]  ;;  %v1435_v31 = vld [vmem:[#allocation5 + $0x288] sm:$0xf0] }
  0x5e   :  { %974 = vmatpush.bf16.msra.mxu0 %v1150_v5  ;;  %v1246_v5 = vor.u32 %v1655_v55, %v1243_v57  ;;  %v1494_v11 = vor.u32 %v1717_v62, %v1491_v0  ;;  %v1459_v55 = vld [vmem:[#allocation5 + $0x2b8] sm:$0xf0]  ;;  %v1741_v58 = vld [vmem:[#allocation5 + $0x3b4] sm:$0xf]  ;;  %v1387_v0 = vld [vmem:[#allocation5 + $0x228] sm:$0xf0] }
  0x5f   :  { %987 = vmatpush.bf16.msra.mxu1 %v1214_v7  ;;  %v1749_v7 = vld [vmem:[#allocation5 + $0x3f4] sm:$0xf]  ;;  %v1523_v57 = vld [vmem:[#allocation5 + $0x338] sm:$0xf0]  ;;  %v1462_v61 = vor.u32 %v1709_v53, %v1459_v55 }
  0x60   :  { %1000 = vmatpush.bf16.msra.mxu2 %v1278_v8  ;;  %v1619_v8 = vld [vmem:[#allocation5 + $0x3f8] sm:$0xf0] }
  0x61   :  { %1013 = vmatpush.bf16.msra.mxu3 %v1342_v12  ;;  %v1558_v12 = vor.u32 %v1733_v1, %v1555_v2  ;;  %v1622_v16 = vor.u32 %v1749_v7, %v1619_v8  ;;  %v1707_v1 = vld [vmem:[#allocation5 + $0x2a4] sm:$0xf]  ;;  %v1590_v2 = vor.u32 %v1741_v58, %v1587_v59  ;;  %v1515_v7 = vld [vmem:[#allocation5 + $0x328] sm:$0xf0] }
  0x62   :  { %975 = vmatpush.bf16.msra.mxu0 %v1142_v18  ;;  %v1731_v18 = vld [vmem:[#allocation5 + $0x364] sm:$0xf] }
  0x63   :  { %988 = vmatpush.bf16.msra.mxu1 %v1206_v19  ;;  %v1547_v19 = vld [vmem:[#allocation5 + $0x368] sm:$0xf0]  ;;  %v1739_v8 = vld [vmem:[#allocation5 + $0x3a4] sm:$0xf] }
  0x64   :  { %1001 = vmatpush.bf16.msra.mxu2 %v1270_v22  ;;  %v1747_v22 = vld [vmem:[#allocation5 + $0x3e4] sm:$0xf] }
  0x65   :  { %1014 = vmatpush.bf16.msra.mxu3 %v1334_v26  ;;  %v1550_v26 = vor.u32 %v1731_v18, %v1547_v19  ;;  %v1614_v30 = vor.u32 %v1747_v22, %v1611_v23  ;;  %v1721_v18 = vld [vmem:[#allocation5 + $0x314] sm:$0xf]  ;;  %v1507_v19 = vld [vmem:[#allocation5 + $0x318] sm:$0xf0] }
  0x66   :  { %976 = vmatpush.bf16.msra.mxu0 %v1134_v32  ;;  %v1729_v32 = vld [vmem:[#allocation5 + $0x354] sm:$0xf]  ;;  %v1571_v23 = vld [vmem:[#allocation5 + $0x398] sm:$0xf0] }
  0x67   :  { %989 = vmatpush.bf16.msra.mxu1 %v1198_v33  ;;  %v1539_v33 = vld [vmem:[#allocation5 + $0x358] sm:$0xf0]  ;;  %v1737_v22 = vld [vmem:[#allocation5 + $0x394] sm:$0xf] }
  0x68   :  { %1002 = vmatpush.bf16.msra.mxu2 %v1262_v34  ;;  %v1745_v34 = vld [vmem:[#allocation5 + $0x3d4] sm:$0xf] }
  0x69   :  { %1015 = vmatpush.bf16.msra.mxu3 %v1326_v39  ;;  %v1542_v39 = vor.u32 %v1729_v32, %v1539_v33  ;;  %v1606_v45 = vor.u32 %v1745_v34, %v1603_v35  ;;  %v1719_v32 = vld [vmem:[#allocation5 + $0x304] sm:$0xf]  ;;  %v1499_v33 = vld [vmem:[#allocation5 + $0x308] sm:$0xf0] }
  0x6a   :  { %977 = vmatpush.bf16.msra.mxu0 %v1126_v48  ;;  %v1743_v48 = vld [vmem:[#allocation5 + $0x3c4] sm:$0xf]  ;;  %v1563_v35 = vld [vmem:[#allocation5 + $0x388] sm:$0xf0] }
  0x6b   :  { %990 = vmatpush.bf16.msra.mxu1 %v1190_v51  ;;  %v1693_v51 = vld [vmem:[#allocation5 + $0x234] sm:$0xf]  ;;  %v1598_v54 = vor.u32 %v1743_v48, %v1595_v49  ;;  %v1735_v34 = vld [vmem:[#allocation5 + $0x384] sm:$0xf] }
  0x6c   :  { %1003 = vmatpush.bf16.msra.mxu2 %v1254_v52  ;;  %v1395_v52 = vld [vmem:[#allocation5 + $0x238] sm:$0xf0] }
  0x6d   :  { %1016 = vmatpush.bf16.msra.mxu3 %v1318_v56  ;;  %v1725_v56 = vld [vmem:[#allocation5 + $0x334] sm:$0xf]  ;;  %v1398_v60 = vor.u32 %v1693_v51, %v1395_v52 }
  0x6e   :  { %978 = vmatpush.bf16.msra.mxu0 %v1118_v63  ;;  %v1526_v62 = vor.u32 %v1725_v56, %v1523_v57  ;;  %v1691_v63 = vld [vmem:[#allocation5 + $0x224] sm:$0xf] }
  0x6f   :  { %991 = vmatpush.bf16.msra.mxu1 %v1182_v3  ;;  %v1451_v3 = vld [vmem:[#allocation5 + $0x2a8] sm:$0xf0] }
  0x70   :  { %1004 = vmatpush.bf16.msra.mxu2 %v1246_v5  ;;  %v1723_v5 = vld [vmem:[#allocation5 + $0x324] sm:$0xf] }
  0x71   :  { %1017 = vmatpush.bf16.msra.mxu3 %v1310_v9  ;;  %979 = vmatmul.bf16.vlgmr.msra.gmra.mxu0 %v1932_v20  ;;  %v1406_v20 = vor.u32 %v1695_v40, %v1403_v43  ;;  %v1579_v9 = vld [vmem:[#allocation5 + $0x3a8] sm:$0xf0]  ;;  %v1566_v40 = vor.u32 %v1735_v34, %v1563_v35 }
  0x72   :  { %1023 = vmatpush.bf16.msrb.mxu0 %v1430_v10  ;;  %992 = vmatmul.bf16.vlgmr.msra.gmra.mxu1 %v1935_v21  ;;  %v1390_v10 = vor.u32 %v1691_v63, %v1387_v0 }
  0x73   :  { %1036 = vmatpush.bf16.msrb.mxu1 %v1494_v11  ;;  %1005 = vmatmul.bf16.vlgmr.msra.gmra.mxu2 %v1927_v4  ;;  %v1711_v4 = vld [vmem:[#allocation5 + $0x2c4] sm:$0xf]  ;;  %v1454_v11 = vor.u32 %v1707_v1, %v1451_v3 }
  0x74   :  { %1049 = vmatpush.bf16.msrb.mxu2 %v1558_v12  ;;  %1018 = vmatmul.bf16.vlgmr.msra.gmra.mxu3 %v1929_v6  ;;  %v1531_v6 = vld [vmem:[#allocation5 + $0x348] sm:$0xf0]  ;;  %v1470_v50 = vor.u32 %v1711_v4, %v1467_v46  ;;  %v1518_v12 = vor.u32 %v1723_v5, %v1515_v7  ;;  %v193_v4 = vld [vmem:[#allocation7] sm:$0x3] }
  0x75   :  { %1062 = vmatpush.bf16.msrb.mxu3 %v1622_v16  ;;  %v1534_v21 = vor.u32 %v1727_v47, %v1531_v6  ;;  %v1582_v16 = vor.u32 %v1739_v8, %v1579_v9  ;;  %v195_v6 = vperm.slane %v193_v4, 0  ;;  %v196_v5 = vperm.slane %v193_v4, 1 }
  0x76   :  { %1024 = vmatpush.bf16.msrb.mxu0 %v1422_v24  ;;  %v1382_v24 = vor.u32 %v1689_v13, %v1379_v14 }
  0x77   :  { %1037 = vmatpush.bf16.msrb.mxu1 %v1486_v25  ;;  %v1446_v25 = vor.u32 %v1705_v15, %v1443_v17 }
  0x78   :  { %1050 = vmatpush.bf16.msrb.mxu2 %v1550_v26  ;;  %v1510_v26 = vor.u32 %v1721_v18, %v1507_v19 }
  0x79   :  { %1063 = vmatpush.bf16.msrb.mxu3 %v1614_v30  ;;  %v1574_v30 = vor.u32 %v1737_v22, %v1571_v23 }
  0x7a   :  { %1025 = vmatpush.bf16.msrb.mxu0 %v1414_v36  ;;  %v1374_v36 = vor.u32 %v1687_v27, %v1371_v28 }
  0x7b   :  { %1038 = vmatpush.bf16.msrb.mxu1 %v1478_v37  ;;  %v1438_v37 = vor.u32 %v1703_v29, %v1435_v31 }
  0x7c   :  { %1051 = vmatpush.bf16.msrb.mxu2 %v1542_v39  ;;  %v1502_v39 = vor.u32 %v1719_v32, %v1499_v33 }
  0x7d   :  { %1064 = vmatpush.bf16.msrb.mxu3 %v1606_v45 }
  0x7e   :  { %1026 = vmatpush.bf16.msrb.mxu0 %v1406_v20 }
  0x7f   :  { %1039 = vmatpush.bf16.msrb.mxu1 %v1470_v50 }
  0x80   :  { %1052 = vmatpush.bf16.msrb.mxu2 %v1534_v21 }
  0x81   :  { %1065 = vmatpush.bf16.msrb.mxu3 %v1598_v54 }
  0x82   :  { %1027 = vmatpush.bf16.msrb.mxu0 %v1398_v60 }
  0x83   :  { %1040 = vmatpush.bf16.msrb.mxu1 %v1462_v61 }
  0x84   :  { %1053 = vmatpush.bf16.msrb.mxu2 %v1526_v62 }
  0x85   :  { %1066 = vmatpush.bf16.msrb.mxu3 %v1590_v2 }
  0x86   :  { %1028 = vmatpush.bf16.msrb.mxu0 %v1390_v10 }
  0x87   :  { %1041 = vmatpush.bf16.msrb.mxu1 %v1454_v11 }
  0x88   :  { %1054 = vmatpush.bf16.msrb.mxu2 %v1518_v12 }
  0x89   :  { %1067 = vmatpush.bf16.msrb.mxu3 %v1582_v16 }
  0x8a   :  { %1029 = vmatpush.bf16.msrb.mxu0 %v1382_v24 }
  0x8b   :  { %1042 = vmatpush.bf16.msrb.mxu1 %v1446_v25 }
  0x8c   :  { %1055 = vmatpush.bf16.msrb.mxu2 %v1510_v26 }
  0x8d   :  { %1068 = vmatpush.bf16.msrb.mxu3 %v1574_v30 }
  0x8e   :  { %1030 = vmatpush.bf16.msrb.mxu0 %v1374_v36 }
  0x8f   :  { %1043 = vmatpush.bf16.msrb.mxu1 %v1438_v37 }
  0x90   :  { %1056 = vmatpush.bf16.msrb.mxu2 %v1502_v39 }
  0x91   :  { %1069 = vmatpush.bf16.msrb.mxu3 %v1566_v40  ;;  %1031 = vmatmul.bf16.vlgmr.msrb.gmra.mxu0 %v1941_v41 }
  0x92   :  { %1044 = vmatmul.bf16.vlgmr.msrb.gmra.mxu1 %v1945_v44 }
  0x93   :  { %1057 = vmatmul.bf16.vlgmr.msrb.gmra.mxu2 %v1939_v38 }
  0x94   :  { %1070 = vmatmul.bf16.vlgmr.msrb.gmra.mxu3 %v1943_v42 }
  0xae   :  { %v876_v43 = vpop.f32.mrf.mxu0 }
  0xaf   :  { %v889_v45 = vpop.f32.mrf.mxu1  ;;  %v877_v48 = vadd.f32 %v876_v43, %v195_v6 }
  0xb1   :  { %v890_v51 = vadd.f32 %v889_v45, %v877_v48 }
  0xb6   :  { %v902_v46 = vpop.f32.mrf.mxu2  ;;  %v878_v49 = vpop.f32.mrf.mxu0 }
  0xb7   :  { %v915_v47 = vpop.f32.mrf.mxu3  ;;  %v891_v20 = vpop.f32.mrf.mxu1  ;;  %v903_v52 = vadd.f32 %v902_v46, %v890_v51 }
  0xb9   :  { %v916_v41 = vadd.f32 %v915_v47, %v903_v52 }
  0xbe   :  { %v904_v50 = vpop.f32.mrf.mxu2 }
  0xbf   :  { %v917_v21 = vpop.f32.mrf.mxu3 }
  0xce   :  { %v928_v53 = vpop.f32.mrf.mxu0 }
  0xcf   :  { %v929_v44 = vadd.f32 %v928_v53, %v916_v41  ;;  %v941_v54 = vpop.f32.mrf.mxu1 }
  0xd1   :  { %v942_v38 = vadd.f32 %v941_v54, %v929_v44 }
  0xd6   :  { %v954_v55 = vpop.f32.mrf.mxu2  ;;  %v930_v58 = vpop.f32.mrf.mxu0 }
  0xd7   :  { %v955_v42 = vadd.f32 %v954_v55, %v942_v38  ;;  %v967_v56 = vpop.f32.mrf.mxu3  ;;  %v943_v59 = vpop.f32.mrf.mxu1 }
  0xd9   :  { %v968_v57 = vadd.f32 %v967_v56, %v955_v42 }
  0xdb   :  { %1075 = vst [vmem:[#allocation8] sm:$0xff] %v968_v57 }
  0xdc   :  { %1087 = dma.vmem_to_hbm [thread:$0]  %s1083_s2, 128, %s1085_s7, [#allocation4]  }
  0xde   :  { %v956_v60 = vpop.f32.mrf.mxu2 }
  0xdf   :  { %v969_v61 = vpop.f32.mrf.mxu3 }
  0xee   :  { %v980_v62 = vpop.f32.mrf.mxu0 }
  0xef   :  { %v993_v63 = vpop.f32.mrf.mxu1  ;;  %v981_v9 = vadd.f32 %v980_v62, %v196_v5 }
  0xf1   :  { %v994_v10 = vadd.f32 %v993_v63, %v981_v9 }
  0xf6   :  { %v1006_v0 = vpop.f32.mrf.mxu2  ;;  %v982_v2 = vpop.f32.mrf.mxu0 }
  0xf7   :  { %v1019_v1 = vpop.f32.mrf.mxu3  ;;  %v995_v3 = vpop.f32.mrf.mxu1  ;;  %v1007_v11 = vadd.f32 %v1006_v0, %v994_v10 }
  0xf9   :  { %v1020_v12 = vadd.f32 %v1019_v1, %v1007_v11 }
  0xfe   :  { %v1008_v7 = vpop.f32.mrf.mxu2 }
  0xff   :  { %v1021_v8 = vpop.f32.mrf.mxu3 }
 0x10e   :  { %v1032_v13 = vpop.f32.mrf.mxu0 }
 0x10f   :  { %v1045_v14 = vpop.f32.mrf.mxu1  ;;  %v1033_v15 = vadd.f32 %v1032_v13, %v1020_v12 }
 0x111   :  { %v1046_v16 = vadd.f32 %v1045_v14, %v1033_v15 }
 0x116   :  { %v1058_v17 = vpop.f32.mrf.mxu2  ;;  %v1034_v22 = vpop.f32.mrf.mxu0 }
 0x117   :  { %v1059_v18 = vadd.f32 %v1058_v17, %v1046_v16  ;;  %v1071_v19 = vpop.f32.mrf.mxu3  ;;  %v1047_v23 = vpop.f32.mrf.mxu1 }
 0x119   :  { %v1072_v24 = vadd.f32 %v1071_v19, %v1059_v18 }
 0x11b   :  { %1076 = vst [vmem:[#allocation9] sm:$0xff] %v1072_v24 }
 0x11c   :  { %1098 = dma.vmem_to_hbm [thread:$0]  %s1094_s8, 128, %s1096_s11, [#allocation10]  }
 0x11e   :  { %v1060_v25 = vpop.f32.mrf.mxu2 }
 0x11f   :  { %v1073_v26 = vpop.f32.mrf.mxu3 }
 0x120   :  { %1882 = dma.done.wait [#allocation4], 128  }
 0x121   :  { %1883 = vsyncadd [#allocation4], 4294967168 }
 0x122   :  { %1884 = dma.done.wait [#allocation10], 128  }
 0x123   :  { %1885 = vsyncadd [#allocation10], 4294967168 }
 0x124   :  { %1107 = vsyncpa [#allocation3], 1 }
 0x125   :  { %1108 = vsyncpa [#allocation6], 1 }
 0x126   :  { %1109 = vsyncpa [#allocation4], 1 }
 0x127   :  { %1110 = vsyncpa [#allocation10], 1 }

</bundles_post_ra>
